<compile_context>
chip_gen: v7x
topology: tpu7x:2x2x1
jax: 0.10.0
libtpu: 0.0.40
codegen_flags: <defaults>
</compile_context>

<pallas_src>
import functools

import jax
import jax.numpy as jnp
from jax.experimental import pallas as pl
from jax.experimental.pallas import tpu as pltpu


# ----------------------------- Pallas kernel -----------------------------

def _intersection_rnn_kernel(
    x_ref,        # (B_pad, I_pad)           f32
    wcat_ref,     # (L, I_pad, 2*I_pad)      bf16  -- [W_yin | W_gy] per layer, resident
    bcat_ref,     # (L, 1, 2*I_pad)          f32   -- [b_yin | b_gy] per layer, resident
    fc_wT_ref,    # (I_pad, O_pad)           bf16  -- pre-transposed fc1 weight
    fc_b_ref,     # (1, O_pad)               f32
    o_ref,        # (B_pad, O_pad)           f32
    *, layers, i_pad,
):
    # Single grid step: everything resident in VMEM; layer loop fully unrolled
    # (static Python loop == full unroll; L is tiny so live ranges are a non-issue);
    # the activation stays in vregs across layers.
    x = x_ref[...]                                            # (B_pad, I_pad) f32
    for l in range(layers):
        # One fused, lane-dense MXU matmul per layer: [y_in_pre | g_y_pre].
        z = jnp.dot(
            x.astype(jnp.bfloat16), wcat_ref[l],
            preferred_element_type=jnp.float32,
        ) + bcat_ref[l]
        y_in = jnp.tanh(z[:, :i_pad])                         # f32 EUP
        g_y = jax.nn.sigmoid(z[:, i_pad:])                    # f32 EUP
        # y_t = g_y*x + (1-g_y)*y_in, rewritten with one fewer multiply.
        x = y_in + g_y * (x - y_in)

    o = jnp.dot(
        x.astype(jnp.bfloat16), fc_wT_ref[...],
        preferred_element_type=jnp.float32,
    ) + fc_b_ref[...]
    o_ref[...] = o.astype(o_ref.dtype)


# ----------------------------- wrapper -----------------------------

def _round_up(n, m):
    return ((n + m - 1) // m) * m


def _pad_axis(a, axis, target):
    pad = target - a.shape[axis]
    if pad == 0:
        return a
    widths = [(0, 0)] * a.ndim
    widths[axis] = (0, pad)
    return jnp.pad(a, widths)


def pack_params(params):
    """Pad / concatenate / cast weights ONCE.  Cache the result across calls.

    Padding invariants (must be kept together): padded bias lanes are zero and
    padded fc_wT rows are zero, so padded activation lanes stay exactly zero
    through every layer and never leak into fc1.
    """
    layers, input_size, _ = params["W_yin"].shape
    output_size = params["fc_w"].shape[0]
    i_pad = _round_up(input_size, 128)
    o_pad = _round_up(output_size, 128)

    w_yin = _pad_axis(_pad_axis(params["W_yin"], 1, i_pad), 2, i_pad)
    w_gy = _pad_axis(_pad_axis(params["W_gy"], 1, i_pad), 2, i_pad)
    w_cat = jnp.concatenate([w_yin, w_gy], axis=2).astype(jnp.bfloat16)   # (L, I_pad, 2*I_pad)

    b_yin = _pad_axis(params["b_yin"], 2, i_pad)
    b_gy = _pad_axis(params["b_gy"], 2, i_pad)
    b_cat = jnp.concatenate([b_yin, b_gy], axis=2).astype(jnp.float32)    # (L, 1, 2*I_pad)

    fc_wT = _pad_axis(_pad_axis(params["fc_w"].T, 0, i_pad), 1, o_pad).astype(jnp.bfloat16)
    fc_b = _pad_axis(params["fc_b"], 1, o_pad).astype(jnp.float32)

    return {
        "w_cat": jax.device_put(w_cat),
        "b_cat": jax.device_put(b_cat),
        "fc_wT": jax.device_put(fc_wT),
        "fc_b": jax.device_put(fc_b),
        "input_size": input_size,
        "output_size": output_size,
    }


@functools.partial(jax.jit, static_argnames=("layers",))
def _forward_packed(x_p, w_cat, b_cat, fc_wT, fc_b, *, layers):
    b_pad, i_pad = x_p.shape
    o_pad = fc_wT.shape[1]

    kernel = functools.partial(_intersection_rnn_kernel, layers=layers, i_pad=i_pad)

    flops = 2 * layers * b_pad * i_pad * (2 * i_pad) + 2 * b_pad * i_pad * o_pad
    transcendentals = 2 * layers * b_pad * i_pad
    bytes_accessed = (x_p.size * 4 + w_cat.size * 2 + b_cat.size * 4
                      + fc_wT.size * 2 + fc_b.size * 4 + b_pad * o_pad * 4)

    return pl.pallas_call(
        kernel,
        out_shape=jax.ShapeDtypeStruct((b_pad, o_pad), jnp.float32),
        grid=(1,),
        in_specs=[
            pl.BlockSpec((b_pad, i_pad), lambda i: (0, 0)),                  # x
            pl.BlockSpec((layers, i_pad, 2 * i_pad), lambda i: (0, 0, 0)),   # all layer W, resident
            pl.BlockSpec((layers, 1, 2 * i_pad), lambda i: (0, 0, 0)),       # all layer b, resident
            pl.BlockSpec((i_pad, o_pad), lambda i: (0, 0)),                  # fc weight^T
            pl.BlockSpec((1, o_pad), lambda i: (0, 0)),                      # fc bias
        ],
        out_specs=pl.BlockSpec((b_pad, o_pad), lambda i: (0, 0)),
        compiler_params=pltpu.CompilerParams(
            dimension_semantics=("arbitrary",),
        ),
        cost_estimate=pl.CostEstimate(
            flops=flops,
            transcendentals=transcendentals,
            bytes_accessed=bytes_accessed,
        ),
    )(x_p, w_cat, b_cat, fc_wT, fc_b)


def intersection_rnn_forward(x, packed, *, layers):
    """Single-timestep forward from reset() (all hidden states zero).

    The h-branch of each cell cannot affect the output under this contract and
    is intentionally omitted from the kernel.
    """
    batch, input_size = x.shape
    assert input_size == packed["input_size"]
    i_pad = packed["w_cat"].shape[1]
    b_pad = _round_up(batch, 8)

    x_p = _pad_axis(_pad_axis(x.astype(jnp.float32), 1, i_pad), 0, b_pad)
    out = _forward_packed(x_p, packed["w_cat"], packed["b_cat"],
                          packed["fc_wT"], packed["fc_b"], layers=layers)
    return out[:batch, :packed["output_size"]]


# ---------------- deterministic parameter construction ----------------

def _xavier_normal(key, shape):
    fan_in, fan_out = shape[-2], shape[-1]
    std = (2.0 / (fan_in + fan_out)) ** 0.5
    return std * jax.random.normal(key, shape, dtype=jnp.float32)


def make_params(key, input_size, output_size, layers):
    # Only parameters that can affect this forward pass are materialized
    # (W_yin, W_gy, b_yin, b_gy, fc).  Biases are zero, exactly as in the
    # PyTorch module (cell biases: torch.zeros; fc bias: nn.init.constant(0)).
    keys = jax.random.split(key, 2 * layers + 1)
    w_yin = [_xavier_normal(keys[2 * l], (input_size, input_size)) for l in range(layers)]
    w_gy = [_xavier_normal(keys[2 * l + 1], (input_size, input_size)) for l in range(layers)]
    return {
        "W_yin": jnp.stack(w_yin),                                     # (L, I, I)
        "W_gy": jnp.stack(w_gy),                                       # (L, I, I)
        "b_yin": jnp.zeros((layers, 1, input_size), jnp.float32),      # (L, 1, I)
        "b_gy": jnp.zeros((layers, 1, input_size), jnp.float32),       # (L, 1, I)
        "fc_w": _xavier_normal(keys[-1], (output_size, input_size)),   # nn.Linear layout (O, I)
        "fc_b": jnp.zeros((1, output_size), jnp.float32),
    }
    # TODO(synk): h-branch params (W_hin, W_gh, U_*, b_hin, b_gh) are dead for this
    # single-step-from-reset forward and are intentionally not built or DMA'd.


# ------------- pure-JAX references -------------

def reference_forward_f32(x, params, *, layers):
    """Full-f32 ground truth matching the PyTorch math (h = 0)."""
    hi = jax.lax.Precision.HIGHEST
    for l in range(layers):
        y_in = jnp.tanh(jnp.dot(x, params["W_yin"][l], precision=hi) + params["b_yin"][l])
        g_y = jax.nn.sigmoid(jnp.dot(x, params["W_gy"][l], precision=hi) + params["b_gy"][l])
        x = g_y * x + (1.0 - g_y) * y_in
    return jnp.dot(x, params["fc_w"].T, precision=hi) + params["fc_b"]


def reference_forward_bf16(x, params, *, layers):
    """Same matmul precision as the kernel (bf16 operands, f32 accumulation)."""
    for l in range(layers):
        xb = x.astype(jnp.bfloat16)
        y_in = jnp.tanh(
            jnp.dot(xb, params["W_yin"][l].astype(jnp.bfloat16),
                    preferred_element_type=jnp.float32) + params["b_yin"][l])
        g_y = jax.nn.sigmoid(
            jnp.dot(xb, params["W_gy"][l].astype(jnp.bfloat16),
                    preferred_element_type=jnp.float32) + params["b_gy"][l])
        x = y_in + g_y * (x - y_in)
    return jnp.dot(x.astype(jnp.bfloat16), params["fc_w"].T.astype(jnp.bfloat16),
                   preferred_element_type=jnp.float32) + params["fc_b"]


if __name__ == "__main__":
    batch = 4
    input_size = 16
    output_size = 8
    layers = 3
    # hidden_size (default 64 in the PyTorch module) parameterizes only the dead
    # h-branch of the cell; it has no effect on this forward pass and is omitted.

    key = jax.random.PRNGKey(0)
    kx, kp = jax.random.split(key)
    x = jax.random.normal(kx, (batch, input_size), dtype=jnp.float32)
    params = make_params(kp, input_size, output_size, layers)

    packed = pack_params(params)                     # packed/cast once, reused per call

    out = intersection_rnn_forward(x, packed, layers=layers)
    out = jax.block_until_ready(out)
    assert out.shape == (batch, output_size)

    # Tight check vs a reference using the same matmul precision as the kernel.
    ref_bf16 = reference_forward_bf16(x, params, layers=layers)
    err_bf16 = jnp.max(jnp.abs(out - ref_bf16))
    assert jnp.allclose(out, ref_bf16, atol=1e-4, rtol=1e-4), f"bf16-matched max abs err {err_bf16}"

    # Loose check vs full-f32 PyTorch-equivalent math (bounds bf16 cast error).
    ref_f32 = reference_forward_f32(x, params, layers=layers)
    err_f32 = jnp.max(jnp.abs(out - ref_f32))
    assert jnp.allclose(out, ref_f32, atol=5e-2, rtol=5e-2), f"f32 ground-truth max abs err {err_f32}"

    print("KERNEL_OK")
</pallas_src>

<mosaic_0001>
module attributes {stable_mosaic.version = 11 : i64} {
  func.func @_intersection_rnn_kernel(%arg0: i32, %arg1: memref<8x128xf32, #tpu.memory_space<vmem>>, %arg2: memref<3x128x256xbf16, #tpu.memory_space<vmem>>, %arg3: memref<3x1x256xf32, #tpu.memory_space<vmem>>, %arg4: memref<128x128xbf16, #tpu.memory_space<vmem>>, %arg5: memref<1x128xf32, #tpu.memory_space<vmem>>, %arg6: memref<8x128xf32, #tpu.memory_space<vmem>>) attributes {dimension_semantics = [#tpu.dimension_semantics<arbitrary>], iteration_bounds = array<i64: 1>, scalar_prefetch = 0 : i64, scratch_operands = 0 : i64, tpu.core_type = #tpu.core_type<tc>, window_params = [{pipeline_mode = #tpu.pipeline_mode<synchronous>, transform_indices = @transform_0, window_bounds = array<i64: 8, 128>}, {pipeline_mode = #tpu.pipeline_mode<synchronous>, transform_indices = @transform_1, window_bounds = array<i64: 3, 128, 256>}, {pipeline_mode = #tpu.pipeline_mode<synchronous>, transform_indices = @transform_2, window_bounds = array<i64: 3, 1, 256>}, {pipeline_mode = #tpu.pipeline_mode<synchronous>, transform_indices = @transform_3, window_bounds = array<i64: 128, 128>}, {pipeline_mode = #tpu.pipeline_mode<synchronous>, transform_indices = @transform_4, window_bounds = array<i64: 1, 128>}, {pipeline_mode = #tpu.pipeline_mode<synchronous>, transform_indices = @transform_5, window_bounds = array<i64: 8, 128>}]} {
    %c0 = arith.constant 0 : index
    %c0_0 = arith.constant 0 : index
    %0 = vector.load %arg1[%c0, %c0_0] : memref<8x128xf32, #tpu.memory_space<vmem>>, vector<8x128xf32>
    %1 = arith.truncf %0 : vector<8x128xf32> to vector<8x128xbf16>
    %c0_1 = arith.constant 0 : index
    %c0_2 = arith.constant 0 : index
    %c0_3 = arith.constant 0 : index
    %2 = vector.load %arg2[%c0_1, %c0_2, %c0_3] : memref<3x128x256xbf16, #tpu.memory_space<vmem>>, vector<1x128x256xbf16>
    %3 = vector.shape_cast %2 : vector<1x128x256xbf16> to vector<128x256xbf16>
    %cst = arith.constant dense<0.000000e+00> : vector<8x256xf32>
    %4 = tpu.matmul %1, %3, %cst {dimension_numbers = #tpu.dot_dimension_numbers<[1], [0], [0], [1], [0, 0, 1, 1], [], []>} : vector<8x128xbf16>, vector<128x256xbf16>, vector<8x256xf32> -> vector<8x256xf32>
    %c0_4 = arith.constant 0 : index
    %c0_5 = arith.constant 0 : index
    %c0_6 = arith.constant 0 : index
    %5 = vector.load %arg3[%c0_4, %c0_5, %c0_6] : memref<3x1x256xf32, #tpu.memory_space<vmem>>, vector<1x1x256xf32>
    %6 = vector.shape_cast %5 : vector<1x1x256xf32> to vector<1x256xf32>
    %7 = vector.broadcast %6 : vector<1x256xf32> to vector<8x256xf32>
    %8 = arith.addf %4, %7 : vector<8x256xf32>
    %9 = vector.extract_strided_slice %8 {offsets = [0, 0], sizes = [8, 128], strides = [1, 1]} : vector<8x256xf32> to vector<8x128xf32>
    %10 = math.tanh %9 : vector<8x128xf32>
    %11 = vector.extract_strided_slice %8 {offsets = [0, 128], sizes = [8, 128], strides = [1, 1]} : vector<8x256xf32> to vector<8x128xf32>
    %12 = arith.negf %11 : vector<8x128xf32>
    %13 = math.exp %12 : vector<8x128xf32>
    %cst_7 = arith.constant 1.000000e+00 : f32
    %14 = vector.broadcast %cst_7 : f32 to vector<8x128xf32>
    %15 = arith.addf %14, %13 : vector<8x128xf32>
    %16 = arith.divf %14, %15 : vector<8x128xf32>
    %17 = arith.subf %0, %10 : vector<8x128xf32>
    %18 = arith.mulf %16, %17 : vector<8x128xf32>
    %19 = arith.addf %10, %18 : vector<8x128xf32>
    %20 = arith.truncf %19 : vector<8x128xf32> to vector<8x128xbf16>
    %c1 = arith.constant 1 : index
    %c0_8 = arith.constant 0 : index
    %c0_9 = arith.constant 0 : index
    %21 = vector.load %arg2[%c1, %c0_8, %c0_9] : memref<3x128x256xbf16, #tpu.memory_space<vmem>>, vector<1x128x256xbf16>
    %22 = vector.shape_cast %21 : vector<1x128x256xbf16> to vector<128x256xbf16>
    %cst_10 = arith.constant dense<0.000000e+00> : vector<8x256xf32>
    %23 = tpu.matmul %20, %22, %cst_10 {dimension_numbers = #tpu.dot_dimension_numbers<[1], [0], [0], [1], [0, 0, 1, 1], [], []>} : vector<8x128xbf16>, vector<128x256xbf16>, vector<8x256xf32> -> vector<8x256xf32>
    %c1_11 = arith.constant 1 : index
    %c0_12 = arith.constant 0 : index
    %c0_13 = arith.constant 0 : index
    %24 = vector.load %arg3[%c1_11, %c0_12, %c0_13] : memref<3x1x256xf32, #tpu.memory_space<vmem>>, vector<1x1x256xf32>
    %25 = vector.shape_cast %24 : vector<1x1x256xf32> to vector<1x256xf32>
    %26 = vector.broadcast %25 : vector<1x256xf32> to vector<8x256xf32>
    %27 = arith.addf %23, %26 : vector<8x256xf32>
    %28 = vector.extract_strided_slice %27 {offsets = [0, 0], sizes = [8, 128], strides = [1, 1]} : vector<8x256xf32> to vector<8x128xf32>
    %29 = math.tanh %28 : vector<8x128xf32>
    %30 = vector.extract_strided_slice %27 {offsets = [0, 128], sizes = [8, 128], strides = [1, 1]} : vector<8x256xf32> to vector<8x128xf32>
    %31 = arith.negf %30 : vector<8x128xf32>
    %32 = math.exp %31 : vector<8x128xf32>
    %cst_14 = arith.constant 1.000000e+00 : f32
    %33 = vector.broadcast %cst_14 : f32 to vector<8x128xf32>
    %34 = arith.addf %33, %32 : vector<8x128xf32>
    %35 = arith.divf %33, %34 : vector<8x128xf32>
    %36 = arith.subf %19, %29 : vector<8x128xf32>
    %37 = arith.mulf %35, %36 : vector<8x128xf32>
    %38 = arith.addf %29, %37 : vector<8x128xf32>
    %39 = arith.truncf %38 : vector<8x128xf32> to vector<8x128xbf16>
    %c2 = arith.constant 2 : index
    %c0_15 = arith.constant 0 : index
    %c0_16 = arith.constant 0 : index
    %40 = vector.load %arg2[%c2, %c0_15, %c0_16] : memref<3x128x256xbf16, #tpu.memory_space<vmem>>, vector<1x128x256xbf16>
    %41 = vector.shape_cast %40 : vector<1x128x256xbf16> to vector<128x256xbf16>
    %cst_17 = arith.constant dense<0.000000e+00> : vector<8x256xf32>
    %42 = tpu.matmul %39, %41, %cst_17 {dimension_numbers = #tpu.dot_dimension_numbers<[1], [0], [0], [1], [0, 0, 1, 1], [], []>} : vector<8x128xbf16>, vector<128x256xbf16>, vector<8x256xf32> -> vector<8x256xf32>
    %c2_18 = arith.constant 2 : index
    %c0_19 = arith.constant 0 : index
    %c0_20 = arith.constant 0 : index
    %43 = vector.load %arg3[%c2_18, %c0_19, %c0_20] : memref<3x1x256xf32, #tpu.memory_space<vmem>>, vector<1x1x256xf32>
    %44 = vector.shape_cast %43 : vector<1x1x256xf32> to vector<1x256xf32>
    %45 = vector.broadcast %44 : vector<1x256xf32> to vector<8x256xf32>
    %46 = arith.addf %42, %45 : vector<8x256xf32>
    %47 = vector.extract_strided_slice %46 {offsets = [0, 0], sizes = [8, 128], strides = [1, 1]} : vector<8x256xf32> to vector<8x128xf32>
    %48 = math.tanh %47 : vector<8x128xf32>
    %49 = vector.extract_strided_slice %46 {offsets = [0, 128], sizes = [8, 128], strides = [1, 1]} : vector<8x256xf32> to vector<8x128xf32>
    %50 = arith.negf %49 : vector<8x128xf32>
    %51 = math.exp %50 : vector<8x128xf32>
    %cst_21 = arith.constant 1.000000e+00 : f32
    %52 = vector.broadcast %cst_21 : f32 to vector<8x128xf32>
    %53 = arith.addf %52, %51 : vector<8x128xf32>
    %54 = arith.divf %52, %53 : vector<8x128xf32>
    %55 = arith.subf %38, %48 : vector<8x128xf32>
    %56 = arith.mulf %54, %55 : vector<8x128xf32>
    %57 = arith.addf %48, %56 : vector<8x128xf32>
    %58 = arith.truncf %57 : vector<8x128xf32> to vector<8x128xbf16>
    %c0_22 = arith.constant 0 : index
    %c0_23 = arith.constant 0 : index
    %59 = vector.load %arg4[%c0_22, %c0_23] : memref<128x128xbf16, #tpu.memory_space<vmem>>, vector<128x128xbf16>
    %cst_24 = arith.constant dense<0.000000e+00> : vector<8x128xf32>
    %60 = tpu.matmul %58, %59, %cst_24 {dimension_numbers = #tpu.dot_dimension_numbers<[1], [0], [0], [1], [0, 0, 1, 1], [], []>} : vector<8x128xbf16>, vector<128x128xbf16>, vector<8x128xf32> -> vector<8x128xf32>
    %c0_25 = arith.constant 0 : index
    %c0_26 = arith.constant 0 : index
    %61 = vector.load %arg5[%c0_25, %c0_26] : memref<1x128xf32, #tpu.memory_space<vmem>>, vector<1x128xf32>
    %62 = vector.broadcast %61 : vector<1x128xf32> to vector<8x128xf32>
    %63 = arith.addf %60, %62 : vector<8x128xf32>
    %c0_27 = arith.constant 0 : index
    %c0_28 = arith.constant 0 : index
    %64 = vector.load %arg6[%c0_27, %c0_28] : memref<8x128xf32, #tpu.memory_space<vmem>>, vector<8x128xf32>
    tpu.vector_store %arg6[%c0_27, %c0_28], %63 {strides = array<i32>} : memref<8x128xf32, #tpu.memory_space<vmem>>, vector<8x128xf32>,
    return
  }
  func.func @transform_0(%arg0: i32) -> (i32, i32) {
    %c0_i32 = arith.constant 0 : i32
    %c0_i32_0 = arith.constant 0 : i32
    %c0_i32_1 = arith.constant 0 : i32
    return %c0_i32, %c0_i32_0 : i32, i32
  }
  func.func @transform_1(%arg0: i32) -> (i32, i32, i32) {
    %c0_i32 = arith.constant 0 : i32
    %c0_i32_0 = arith.constant 0 : i32
    %c0_i32_1 = arith.constant 0 : i32
    %c0_i32_2 = arith.constant 0 : i32
    return %c0_i32, %c0_i32_0, %c0_i32_1 : i32, i32, i32
  }
  func.func @transform_2(%arg0: i32) -> (i32, i32, i32) {
    %c0_i32 = arith.constant 0 : i32
    %c0_i32_0 = arith.constant 0 : i32
    %c0_i32_1 = arith.constant 0 : i32
    %c0_i32_2 = arith.constant 0 : i32
    return %c0_i32, %c0_i32_0, %c0_i32_1 : i32, i32, i32
  }
  func.func @transform_3(%arg0: i32) -> (i32, i32) {
    %c0_i32 = arith.constant 0 : i32
    %c0_i32_0 = arith.constant 0 : i32
    %c0_i32_1 = arith.constant 0 : i32
    return %c0_i32, %c0_i32_0 : i32, i32
  }
  func.func @transform_4(%arg0: i32) -> (i32, i32) {
    %c0_i32 = arith.constant 0 : i32
    %c0_i32_0 = arith.constant 0 : i32
    %c0_i32_1 = arith.constant 0 : i32
    return %c0_i32, %c0_i32_0 : i32, i32
  }
  func.func @transform_5(%arg0: i32) -> (i32, i32) {
    %c0_i32 = arith.constant 0 : i32
    %c0_i32_0 = arith.constant 0 : i32
    %c0_i32_1 = arith.constant 0 : i32
    return %c0_i32, %c0_i32_0 : i32, i32
  }
}

</mosaic_0001>

<bundles_post_ra>
// kernel: _forward_packed.1
= control target key start
LH: loop header
LB: loop body
LE: loop exit
PB: predicated region body
PF: predicated region fallthrough
CT: control target
= control target key end

     0   :  { %10 = vsyncpa [#allocation3], 0  ;;  %s1080_s0 = inlined_call_operand.hbm [shape: f32[8,128], index: 0, kind: input, shape index: {}]   ;;  %s1081_s1 = inlined_call_operand.hbm [shape: bf16[3,128,256], index: 1, kind: input, shape index: {}]   ;;  %s1082_s2 = inlined_call_operand.vmem [shape: f32[3,1,256], index: 2, kind: input, shape index: {}]   ;;  %s1083_s3 = inlined_call_operand.hbm [shape: bf16[128,128], index: 3, kind: input, shape index: {}]   ;;  %s1084_s4 = inlined_call_operand.vmem [shape: f32[1,128], index: 4, kind: input, shape index: {}]   ;;  %s1085_s5 = inlined_call_operand.hbm [shape: f32[8,128], index: 5, kind: output, shape index: {}]  }
   0x1   :  { %11 = vsyncpa [#allocation6], 0 }
   0x2   :  { %12 = vsyncpa [#allocation4], 0  ;;  %s969_s18 = smov [#allocation5]   ;;  %s875_s22 = scalar_lea.hbm %s1081_s1, 6144 }
   0x3   :  { %s28_s19 = sshll.u32 %s969_s18, 4  ;;  %p876_p0 = scmp.ne.s32.totalorder %s1081_s1, %s875_s22  ;;  %s29_s19 = int_to_ptr.vmem [resolvable:$true] %s28_s19 }
   0x4   :  { %p879_p1 = scmp.lt.u32.totalorder %s875_s22, %s1081_s1 }
   0x6   :  { %p881_p2 = pnand %p879_p1, %p876_p0 }
   0x8   :  { %884 = shalt.err (!%p881_p2)
}
   0x9   :  { %s885_s27 = scalar_lea.vmem %s29_s19, 6144  ;;  %p890_p4 = scmp.lt.s32.totalorder %s29_s19, %s29_s19 }
   0xa   :  { %p886_p3 = scmp.ne.s32.totalorder %s29_s19, %s885_s27  ;;  %p891_p5 = scmp.lt.s32.totalorder %s885_s27, %s885_s27 }
   0xc   :  { %p892_p6 = por %p891_p5, %p890_p4 }
   0xe   :  { %p893_p7 = pnand %p892_p6, %p886_p3 }
  0x10   :  { %896 = shalt.err (!%p893_p7)
}
  0x11   :  { %s970_s28 = smov 128   ;;  %s971_s29 = smov 8  }
  0x12   :  { %34 = dma.hbm_to_vmem [thread:$0]  %s1081_s1, 6144, %s29_s19, [#allocation6], %s970_s28, %s970_s28, %s971_s29  }
  0x13   :  { %s972_s7 = smov [#allocation2]   ;;  %s973_s9 = smov [#allocation7]  }
  0x14   :  { %s19_s8 = sshll.u32 %s972_s7, 4  ;;  %s42_s10 = sshll.u32 %s973_s9, 4  ;;  %s20_s8 = int_to_ptr.vmem [resolvable:$true] %s19_s8  ;;  %s43_s10 = int_to_ptr.vmem [resolvable:$true] %s42_s10 }
  0x15   :  { %s897_s13 = scalar_lea.hbm %s1080_s0, 128 }
  0x16   :  { %p898_p8 = scmp.ne.s32.totalorder %s1080_s0, %s897_s13  ;;  %p901_p9 = scmp.lt.u32.totalorder %s897_s13, %s1080_s0 }
  0x18   :  { %p903_p10 = pnand %p901_p9, %p898_p8 }
  0x1a   :  { %906 = shalt.err (!%p903_p10)
}
  0x1b   :  { %s907_s1 = scalar_lea.vmem %s20_s8, 128  ;;  %p912_p12 = scmp.lt.s32.totalorder %s20_s8, %s20_s8 }
  0x1c   :  { %p908_p11 = scmp.ne.s32.totalorder %s20_s8, %s907_s1  ;;  %p913_p13 = scmp.lt.s32.totalorder %s907_s1, %s907_s1 }
  0x1e   :  { %p914_p0 = por %p913_p13, %p912_p12 }
  0x20   :  { %p915_p1 = pnand %p914_p0, %p908_p11 }
  0x22   :  { %918 = shalt.err (!%p915_p1)
}
  0x23   :  { %22 = dma.hbm_to_vmem [thread:$0]  %s1080_s0, 128, %s20_s8, [#allocation3]  }
  0x24   :  { %s919_s22 = scalar_lea.hbm %s1083_s3, 1024 }
  0x25   :  { %p920_p2 = scmp.ne.s32.totalorder %s1083_s3, %s919_s22  ;;  %p923_p3 = scmp.lt.u32.totalorder %s919_s22, %s1083_s3 }
  0x27   :  { %p925_p4 = pnand %p923_p3, %p920_p2 }
  0x29   :  { %928 = shalt.err (!%p925_p4)
}
  0x2a   :  { %s929_s27 = scalar_lea.vmem %s43_s10, 1024  ;;  %p934_p6 = scmp.lt.s32.totalorder %s43_s10, %s43_s10 }
  0x2b   :  { %p930_p5 = scmp.ne.s32.totalorder %s43_s10, %s929_s27  ;;  %p935_p7 = scmp.lt.s32.totalorder %s929_s27, %s929_s27 }
  0x2d   :  { %p936_p8 = por %p935_p7, %p934_p6 }
  0x2f   :  { %p937_p9 = pnand %p936_p8, %p930_p5 }
  0x31   :  { %940 = shalt.err (!%p937_p9)
}
  0x32   :  { %s974_s0 = smov 64   ;;  %s975_s28 = smov 4  }
  0x33   :  { %48 = dma.hbm_to_vmem [thread:$0]  %s1083_s3, 1024, %s43_s10, [#allocation6], %s974_s0, %s974_s0, %s975_s28  }
  0x34   :  { %963 = dma.done.wait [#allocation3], 128  }
  0x35   :  { %964 = vsyncadd [#allocation3], 4294967168 }
  0x36   :  { %965 = dma.done.wait [#allocation6], 7168  }
  0x37   :  { %966 = vsyncadd [#allocation6], 4294960128  ;;  %v976_v0 = vmov 0   ;;  %v777_v1 = vld [vmem:[#allocation5 + $0x4] ss:$8 sps:$4 sm:$0xff]   ;;  %v61_v17 = vld [vmem:[#allocation2] sm:$0xff]  ;;  %v81_v35 = vlaneseq }
  0x38   :  { %203 = vmatprep.mubr.bf16.mxu0 %v976_v0  ;;  %365 = vmatprep.mubr.bf16.mxu1 %v976_v0  ;;  %v779_v2 = vld [vmem:[#allocation5] ss:$8 sps:$4 sm:$0xff]   ;;  %v780_v3 = vld [vmem:[#allocation5 + $0x14] ss:$8 sps:$4 sm:$0xff]   ;;  %v782_v4 = vld [vmem:[#allocation5 + $0x10] ss:$8 sps:$4 sm:$0xff]   ;;  %v62_v18 = vpack.c.bf16 %v61_v17, %v61_v17 }
  0x39   :  { %171 = vmatprep.subr.bf16.mxu0 %v777_v1  ;;  %v783_v5 = vld [vmem:[#allocation5 + $0x24] ss:$8 sps:$4 sm:$0xff]   ;;  %v785_v6 = vld [vmem:[#allocation5 + $0x20] ss:$8 sps:$4 sm:$0xff]   ;;  %v786_v7 = vld [vmem:[#allocation5 + $0x34] ss:$8 sps:$4 sm:$0xff]  }
  0x3a   :  { %172 = vmatpush1.bf16.msra.mxu0 %v779_v2  ;;  %v788_v8 = vld [vmem:[#allocation5 + $0x30] ss:$8 sps:$4 sm:$0xff]   ;;  %v789_v9 = vld [vmem:[#allocation5 + $0x44] ss:$8 sps:$4 sm:$0xff]   ;;  %v791_v10 = vld [vmem:[#allocation5 + $0x40] ss:$8 sps:$4 sm:$0xff]  }
  0x3b   :  { %173 = vmatprep.subr.bf16.mxu0 %v780_v3  ;;  %v792_v11 = vld [vmem:[#allocation5 + $0x54] ss:$8 sps:$4 sm:$0xff]   ;;  %v794_v12 = vld [vmem:[#allocation5 + $0x50] ss:$8 sps:$4 sm:$0xff]   ;;  %v795_v13 = vld [vmem:[#allocation5 + $0x64] ss:$8 sps:$4 sm:$0xff]  }
  0x3c   :  { %v797_v14 = vld [vmem:[#allocation5 + $0x60] ss:$8 sps:$4 sm:$0xff]   ;;  %v798_v15 = vld [vmem:[#allocation5 + $0x74] ss:$8 sps:$4 sm:$0xff]   ;;  %v800_v16 = vld [vmem:[#allocation5 + $0x70] ss:$8 sps:$4 sm:$0xff]  }
  0x3d   :  { %v801_v19 = vld [vmem:[#allocation5 + $0x84] ss:$8 sps:$4 sm:$0xff]   ;;  %v803_v20 = vld [vmem:[#allocation5 + $0x80] ss:$8 sps:$4 sm:$0xff]   ;;  %v804_v21 = vld [vmem:[#allocation5 + $0x94] ss:$8 sps:$4 sm:$0xff]  }
  0x3e   :  { %174 = vmatpush1.bf16.msra.mxu0 %v782_v4  ;;  %333 = vmatprep.subr.bf16.mxu1 %v801_v19  ;;  %v806_v22 = vld [vmem:[#allocation5 + $0x90] ss:$8 sps:$4 sm:$0xff]   ;;  %v807_v23 = vld [vmem:[#allocation5 + $0xa4] ss:$8 sps:$4 sm:$0xff]   ;;  %v809_v24 = vld [vmem:[#allocation5 + $0xa0] ss:$8 sps:$4 sm:$0xff]  }
  0x3f   :  { %175 = vmatprep.subr.bf16.mxu0 %v783_v5  ;;  %334 = vmatpush1.bf16.msra.mxu1 %v803_v20  ;;  %v810_v25 = vld [vmem:[#allocation5 + $0xb4] ss:$8 sps:$4 sm:$0xff]   ;;  %v812_v26 = vld [vmem:[#allocation5 + $0xb0] ss:$8 sps:$4 sm:$0xff]   ;;  %v813_v27 = vld [vmem:[#allocation5 + $0xc4] ss:$8 sps:$4 sm:$0xff]  }
  0x40   :  { %335 = vmatprep.subr.bf16.mxu1 %v804_v21  ;;  %v815_v28 = vld [vmem:[#allocation5 + $0xc0] ss:$8 sps:$4 sm:$0xff]   ;;  %v816_v29 = vld [vmem:[#allocation5 + $0xd4] ss:$8 sps:$4 sm:$0xff]   ;;  %v818_v30 = vld [vmem:[#allocation5 + $0xd0] ss:$8 sps:$4 sm:$0xff]  }
  0x41   :  { %v819_v31 = vld [vmem:[#allocation5 + $0xe4] ss:$8 sps:$4 sm:$0xff]   ;;  %v821_v32 = vld [vmem:[#allocation5 + $0xe0] ss:$8 sps:$4 sm:$0xff]   ;;  %v822_v33 = vld [vmem:[#allocation5 + $0xf4] ss:$8 sps:$4 sm:$0xff]  }
  0x42   :  { %176 = vmatpush1.bf16.msra.mxu0 %v785_v6  ;;  %v824_v34 = vld [vmem:[#allocation5 + $0xf0] ss:$8 sps:$4 sm:$0xff]   ;;  %v82_v36 = vshrl.u32 %v81_v35, 7  ;;  %v827_v57 = vld [vmem:[#allocation5 + $0x104] ss:$8 sps:$4 sm:$0xff]   ;;  %vm978_vm0 = vmmov 0  }
  0x43   :  { %177 = vmatprep.subr.bf16.mxu0 %v786_v7  ;;  %336 = vmatpush1.bf16.msra.mxu1 %v806_v22  ;;  %v79_v38 = vld [vmem:[%s1082_s2] sm:$0x3]  ;;  %v825_v58 = vld [vmem:[#allocation5 + $0x100] ss:$8 sps:$4 sm:$0xff]   ;;  %v830_v59 = vld [vmem:[#allocation5 + $0x114] ss:$8 sps:$4 sm:$0xff]  }
  0x44   :  { %337 = vmatprep.subr.bf16.mxu1 %v807_v23  ;;  %v1046_v37 = vsub.s32 1, %v82_v36  ;;  %v1052_v44 = vsub.s32 0, %v82_v36  ;;  %v828_v60 = vld [vmem:[#allocation5 + $0x110] ss:$8 sps:$4 sm:$0xff]   ;;  %v833_v61 = vld [vmem:[#allocation5 + $0x124] ss:$8 sps:$4 sm:$0xff]  }
  0x45   :  { %v831_v62 = vld [vmem:[#allocation5 + $0x120] ss:$8 sps:$4 sm:$0xff]   ;;  %v836_v63 = vld [vmem:[#allocation5 + $0x134] ss:$8 sps:$4 sm:$0xff]   ;;  %v839_v1 = vld [vmem:[#allocation5 + $0x144] ss:$8 sps:$4 sm:$0xff]  }
  0x46   :  { %178 = vmatpush1.bf16.msra.mxu0 %v788_v8  ;;  %v88_v39 = vrot.slane %v79_v38, %v1046_v37  ;;  %v84_v47 = vrot.slane %v79_v38, %v1052_v44  ;;  %v837_v2 = vld [vmem:[#allocation5 + $0x140] ss:$8 sps:$4 sm:$0xff]   ;;  %v842_v3 = vld [vmem:[#allocation5 + $0x154] ss:$8 sps:$4 sm:$0xff]   ;;  %v840_v4 = vld [vmem:[#allocation5 + $0x150] ss:$8 sps:$4 sm:$0xff]  }
  0x47   :  { %179 = vmatprep.subr.bf16.mxu0 %v789_v9  ;;  %338 = vmatpush1.bf16.msra.mxu1 %v809_v24  ;;  %v845_v5 = vld [vmem:[#allocation5 + $0x164] ss:$8 sps:$4 sm:$0xff]   ;;  %v843_v6 = vld [vmem:[#allocation5 + $0x160] ss:$8 sps:$4 sm:$0xff]   ;;  %v848_v7 = vld [vmem:[#allocation5 + $0x174] ss:$8 sps:$4 sm:$0xff]  }
  0x48   :  { %339 = vmatprep.subr.bf16.mxu1 %v810_v25  ;;  %v846_v8 = vld [vmem:[#allocation5 + $0x170] ss:$8 sps:$4 sm:$0xff]   ;;  %v710_v36 = vld [vmem:[%s1082_s2 + $0x4] sm:$0x3]  ;;  %s979_s12 = smov [#allocation8]  }
  0x49   :  { %v692_v9 = vld [vmem:[%s1082_s2 + $0x2] sm:$0x3]  ;;  %v412_v38 = vrot.slane %v710_v36, %v1046_v37  ;;  %s665_s13 = sshll.u32 %s979_s12, 4  ;;  %s666_s13 = int_to_ptr.vmem [resolvable:$true] %s665_s13 }
  0x4a   :  { %180 = vmatpush1.bf16.msra.mxu0 %v791_v10  ;;  %v250_v10 = vrot.slane %v692_v9, %v1046_v37  ;;  %v856_v35 = vld [vmem:[#allocation7 + $0x38] sm:$0xff]   ;;  %s941_s14 = scalar_lea.vmem %s666_s13, 128  ;;  %p946_p11 = scmp.lt.s32.totalorder %s666_s13, %s666_s13 }
  0x4b   :  { %181 = vmatprep.subr.bf16.mxu0 %v792_v11  ;;  %340 = vmatpush1.bf16.msra.mxu1 %v812_v26  ;;  %p942_p10 = scmp.ne.s32.totalorder %s666_s13, %s941_s14  ;;  %p947_p12 = scmp.lt.s32.totalorder %s941_s14, %s941_s14 }
  0x4c   :  { %341 = vmatprep.subr.bf16.mxu1 %v813_v27  ;;  %v849_v27 = vld [vmem:[#allocation7] sm:$0xff]  }
  0x4d   :  { %p948_p13 = por %p947_p12, %p946_p11 }
  0x4e   :  { %182 = vmatpush1.bf16.msra.mxu0 %v794_v12 }
  0x4f   :  { %183 = vmatprep.subr.bf16.mxu0 %v795_v13  ;;  %342 = vmatpush1.bf16.msra.mxu1 %v815_v28  ;;  %v977_v28 = vmov 0.0   ;;  %p949_p0 = pnand %p948_p13, %p942_p10 }
  0x50   :  { %343 = vmatprep.subr.bf16.mxu1 %v816_v29  ;;  %v850_v29 = vld [vmem:[#allocation7 + $0x8] sm:$0xff]  }
  0x52   :  { %184 = vmatpush1.bf16.msra.mxu0 %v797_v14 }
  0x53   :  { %185 = vmatprep.subr.bf16.mxu0 %v798_v15  ;;  %344 = vmatpush1.bf16.msra.mxu1 %v818_v30  ;;  %v851_v30 = vld [vmem:[#allocation7 + $0x10] sm:$0xff]  }
  0x54   :  { %345 = vmatprep.subr.bf16.mxu1 %v819_v31  ;;  %v852_v31 = vld [vmem:[#allocation7 + $0x18] sm:$0xff]  }
  0x56   :  { %186 = vmatpush1.bf16.msra.mxu0 %v800_v16 }
  0x57   :  { %346 = vmatpush1.bf16.msra.mxu1 %v821_v32  ;;  %495 = vmatprep.subr.bf16.mxu0 %v827_v57  ;;  %v853_v32 = vld [vmem:[#allocation7 + $0x20] sm:$0xff]  }
  0x58   :  { %347 = vmatprep.subr.bf16.mxu1 %v822_v33  ;;  %v854_v33 = vld [vmem:[#allocation7 + $0x28] sm:$0xff]  }
  0x59   :  { %204 = vmatmul.mubr.bf16.vlgmr.msra.gmra.mrb[0].mxu0 %v62_v18 }
  0x5a   :  { %527 = vmatprep.mubr.bf16.mxu0 %v976_v0  ;;  %496 = vmatpush1.bf16.msra.mxu0 %v825_v58  ;;  %v834_v0 = vld [vmem:[#allocation5 + $0x130] ss:$8 sps:$4 sm:$0xff]  }
  0x5b   :  { %348 = vmatpush1.bf16.msra.mxu1 %v824_v34  ;;  %497 = vmatprep.subr.bf16.mxu0 %v830_v59  ;;  %v855_v34 = vld [vmem:[#allocation7 + $0x30] sm:$0xff]  }
  0x5c   :  { %746 = vmatprep.subr.bf16.mxu1 %v977_v28 }
  0x5e   :  { %498 = vmatpush1.bf16.msra.mxu0 %v828_v60 }
  0x5f   :  { %499 = vmatprep.subr.bf16.mxu0 %v833_v61 }
  0x62   :  { %500 = vmatpush1.bf16.msra.mxu0 %v831_v62 }
  0x63   :  { %501 = vmatprep.subr.bf16.mxu0 %v836_v63 }
  0x66   :  { %502 = vmatpush1.bf16.msra.mxu0 %v834_v0 }
  0x67   :  { %503 = vmatprep.subr.bf16.mxu0 %v839_v1 }
  0x6a   :  { %504 = vmatpush1.bf16.msra.mxu0 %v837_v2 }
  0x6b   :  { %505 = vmatprep.subr.bf16.mxu0 %v842_v3 }
  0x6e   :  { %506 = vmatpush1.bf16.msra.mxu0 %v840_v4 }
  0x6f   :  { %507 = vmatprep.subr.bf16.mxu0 %v845_v5 }
  0x72   :  { %508 = vmatpush1.bf16.msra.mxu0 %v843_v6 }
  0x73   :  { %509 = vmatprep.subr.bf16.mxu0 %v848_v7 }
  0x76   :  { %510 = vmatpush1.bf16.msra.mxu0 %v846_v8 }
 0x12c   :  { %v205_v40 = vpop.f32.mrb[0].mxu0 }
 0x12d   :  { %v207_v41 = vpop.f32.mrb[1].mxu0  ;;  %v206_v48 = vadd.f32 %v205_v40, %v84_v47 }
 0x12e   :  { %v208_v42 = vadd.f32 %v207_v41, %v88_v39  ;;  %v209_v43 = vpop.f32.mrb[2].mxu0 }
 0x12f   :  { %v210_v45 = vpop.f32.mrb[3].mxu0 }
 0x130   :  { %v691_v46 = vmul.f32 -1.442695, %v208_v42 }
 0x132   :  { %857 = vpow2.f32 %v691_v46  ;;  %v408_v46 = vrot.slane %v710_v36, %v1052_v44 }
 0x133   :  { %859 = vtanh.f32 %v206_v48 }
 0x13c   :  { %v858_v49 = vpop.eup %857 }
 0x13d   :  { %v216_v50 = vadd.f32 1.0, %v858_v49  ;;  %v860_v51 = vpop.eup %859 }
 0x13e   :  { %v219_v52 = vsub.f32 %v61_v17, %v860_v51  ;;  %v246_v17 = vrot.slane %v692_v9, %v1052_v44 }
 0x13f   :  { %861 = vrcp.f32 %v216_v50 }
 0x149   :  { %v862_v53 = vpop.eup %861 }
 0x14a   :  { %v220_v54 = vmul.f32 %v862_v53, %v219_v52 }
 0x14c   :  { %v221_v55 = vadd.f32 %v860_v51, %v220_v54 }
 0x14e   :  { %v222_v56 = vpack.c.bf16 %v221_v55, %v221_v55 }
 0x150   :  { %366 = vmatmul.mubr.bf16.vlgmr.msra.gmra.mrb[0].mxu1 %v222_v56 }
 0x151   :  { %747 = vmatpush3.bf16.msra.mxu1 %v849_v27  ;;  %762 = vmatprep.mubr.msk.bf16.mxu1 %vm978_vm0, %v977_v28 }
 0x152   :  { %748 = vmatprep.subr.bf16.mxu1 %v977_v28 }
 0x155   :  { %749 = vmatpush3.bf16.msra.mxu1 %v850_v29 }
 0x156   :  { %750 = vmatprep.subr.bf16.mxu1 %v977_v28 }
 0x159   :  { %751 = vmatpush3.bf16.msra.mxu1 %v851_v30 }
 0x15a   :  { %752 = vmatprep.subr.bf16.mxu1 %v977_v28 }
 0x15d   :  { %753 = vmatpush3.bf16.msra.mxu1 %v852_v31 }
 0x15e   :  { %754 = vmatprep.subr.bf16.mxu1 %v977_v28 }
 0x161   :  { %755 = vmatpush3.bf16.msra.mxu1 %v853_v32 }
 0x162   :  { %756 = vmatprep.subr.bf16.mxu1 %v977_v28 }
 0x165   :  { %757 = vmatpush3.bf16.msra.mxu1 %v854_v33 }
 0x166   :  { %758 = vmatprep.subr.bf16.mxu1 %v977_v28 }
 0x169   :  { %759 = vmatpush3.bf16.msra.mxu1 %v855_v34 }
 0x16a   :  { %760 = vmatprep.subr.bf16.mxu1 %v977_v28 }
 0x16d   :  { %761 = vmatpush3.bf16.msra.mxu1 %v856_v35 }
 0x223   :  { %v367_v11 = vpop.f32.mrb[0].mxu1 }
 0x224   :  { %v369_v12 = vpop.f32.mrb[1].mxu1  ;;  %v368_v18 = vadd.f32 %v367_v11, %v246_v17 }
 0x225   :  { %v370_v13 = vadd.f32 %v369_v12, %v250_v10  ;;  %v371_v14 = vpop.f32.mrb[2].mxu1 }
 0x226   :  { %v372_v15 = vpop.f32.mrb[3].mxu1 }
 0x227   :  { %v709_v16 = vmul.f32 -1.442695, %v370_v13 }
 0x229   :  { %863 = vpow2.f32 %v709_v16 }
 0x22a   :  { %865 = vtanh.f32 %v368_v18 }
 0x233   :  { %v864_v19 = vpop.eup %863 }
 0x234   :  { %v378_v20 = vadd.f32 1.0, %v864_v19  ;;  %v866_v21 = vpop.eup %865 }
 0x235   :  { %v381_v22 = vsub.f32 %v221_v55, %v866_v21  ;;  %v728_v55 = vld [vmem:[%s1084_s4] ss:$0 sm:$0xff] }
 0x236   :  { %867 = vrcp.f32 %v378_v20 }
 0x240   :  { %v868_v23 = vpop.eup %867 }
 0x241   :  { %v382_v24 = vmul.f32 %v868_v23, %v381_v22 }
 0x243   :  { %v383_v25 = vadd.f32 %v866_v21, %v382_v24 }
 0x245   :  { %v384_v26 = vpack.c.bf16 %v383_v25, %v383_v25 }
 0x247   :  { %528 = vmatmul.mubr.bf16.vlgmr.msra.gmra.mrb[4].mxu0 %v384_v26 }
 0x31a   :  { %v529_v39 = vpop.f32.mrb[4].mxu0 }
 0x31b   :  { %v531_v40 = vpop.f32.mrb[5].mxu0  ;;  %v530_v47 = vadd.f32 %v529_v39, %v408_v46 }
 0x31c   :  { %v532_v41 = vadd.f32 %v531_v40, %v412_v38  ;;  %v533_v42 = vpop.f32.mrb[6].mxu0 }
 0x31d   :  { %v534_v43 = vpop.f32.mrb[7].mxu0 }
 0x31e   :  { %v727_v45 = vmul.f32 -1.442695, %v532_v41 }
 0x320   :  { %869 = vpow2.f32 %v727_v45 }
 0x321   :  { %871 = vtanh.f32 %v530_v47 }
 0x32a   :  { %v870_v48 = vpop.eup %869 }
 0x32b   :  { %v540_v49 = vadd.f32 1.0, %v870_v48  ;;  %v872_v50 = vpop.eup %871 }
 0x32c   :  { %v543_v51 = vsub.f32 %v383_v25, %v872_v50 }
 0x32d   :  { %873 = vrcp.f32 %v540_v49 }
 0x337   :  { %v874_v52 = vpop.eup %873 }
 0x338   :  { %v544_v53 = vmul.f32 %v874_v52, %v543_v51 }
 0x33a   :  { %v545_v54 = vadd.f32 %v872_v50, %v544_v53 }
 0x33c   :  { %v546_v37 = vpack.c.bf16 %v545_v54, %v545_v54 }
 0x33e   :  { %763 = vmatmul.mubr.bf16.vlgmr.msra.gmra.mrb[4].mxu1 %v546_v37 }
 0x411   :  { %v652_v56 = vpop.f32.mrb[4].mxu1 }
 0x412   :  { %v653_v44 = vadd.f32 %v728_v55, %v652_v56  ;;  %v764_v57 = vpop.f32.mrb[5].mxu1 }
 0x413   :  { %v655_v58 = vpop.f32.mrb[6].mxu1 }
 0x414   :  { %658 = vst [vmem:[#allocation8] sm:$0xff] %v653_v44  ;;  %v765_v59 = vpop.f32.mrb[7].mxu1 }
 0x415   :  { %952 = shalt.err (!%p949_p0)
}
 0x416   :  { %s953_s4 = scalar_lea.hbm %s1085_s5, 128 }
 0x417   :  { %p954_p1 = scmp.ne.s32.totalorder %s1085_s5, %s953_s4  ;;  %p957_p2 = scmp.lt.u32.totalorder %s953_s4, %s1085_s5 }
 0x419   :  { %p959_p3 = pnand %p957_p2, %p954_p1 }
 0x41b   :  { %962 = shalt.err (!%p959_p3)
}
 0x41c   :  { %668 = dma.vmem_to_hbm [thread:$0]  %s666_s13, 128, %s1085_s5, [#allocation4]  }
 0x41d   :  { %967 = dma.done.wait [#allocation4], 128  }
 0x41e   :  { %968 = vsyncadd [#allocation4], 4294967168 }
 0x41f   :  { %672 = vsyncpa [#allocation3], 1 }
 0x420   :  { %673 = vsyncpa [#allocation6], 1 }
 0x421   :  { %674 = vsyncpa [#allocation4], 1 }

</bundles_post_ra>
